<compile_context>
chip_gen: v6e
topology: v6e:2x2x1
jax: 0.10.0
libtpu: 0.0.40
codegen_flags: <defaults>
</compile_context>

<pallas_src>
import functools

import numpy as np
import jax
import jax.numpy as jnp
from jax.experimental import pallas as pl
from jax.experimental.pallas import tpu as pltpu


_LN_EPS = 1e-5
_VMEM_LIMIT_BYTES = 40 * 1024 * 1024   # scoped-VMEM cap; safe on v5e/v6e/v7x
_VMEM_TILE_BUDGET = 20 * 1024 * 1024   # budget for tiles + resident weights


def _round_up(n, m):
    return (n + m - 1) // m * m


def _pm_kernel_fused(x_ref, b_ref, we_ref, wo_ref, o_ref):
    """In-kernel 2x2 gather + LayerNorm(4C) + affine-folded Linear.

    x_ref:  (tn, 2, W2, 2C)  even-h plane carries [x0|x2], odd-h [x1|x3]
    b_ref:  (1, C2p)         beta folded through the Linear (f32)
    we_ref: (2C, C2p)        folded weight rows for the [x0|x2] channels
    wo_ref: (2C, C2p)        folded weight rows for the [x1|x3] channels
    o_ref:  (tn*W2, C2p)
    """
    x = x_ref[...]
    tn, _, w2, c2 = x.shape
    rows = tn * w2
    xe = x[:, 0].astype(jnp.float32).reshape(rows, c2)   # (rows, 2C) = [x0|x2]
    xo = x[:, 1].astype(jnp.float32).reshape(rows, c2)   # (rows, 2C) = [x1|x3]

    # Fused single-pass LN statistics over the full 4C feature axis.
    inv_n = 1.0 / float(2 * c2)
    s = jnp.sum(xe, axis=-1, keepdims=True) + jnp.sum(xo, axis=-1, keepdims=True)
    ss = (jnp.sum(xe * xe, axis=-1, keepdims=True)
          + jnp.sum(xo * xo, axis=-1, keepdims=True))
    mean = s * inv_n
    var = jnp.maximum(ss * inv_n - mean * mean, 0.0)
    inv = jax.lax.rsqrt(var + _LN_EPS)

    wd = we_ref.dtype
    xh_e = ((xe - mean) * inv).astype(wd)
    xh_o = ((xo - mean) * inv).astype(wd)
    y = jnp.dot(xh_e, we_ref[...], preferred_element_type=jnp.float32)
    y = y + jnp.dot(xh_o, wo_ref[...], preferred_element_type=jnp.float32)
    y = y + b_ref[...].astype(jnp.float32)
    o_ref[...] = y.astype(o_ref.dtype)


def _pm_kernel_slab(x_ref, b_ref, w_ref, o_ref):
    """LayerNorm(4C) + affine-folded Linear on a pre-gathered (rows, 4C) slab."""
    x = x_ref[...].astype(jnp.float32)                   # (tm, 4C)
    inv_n = 1.0 / float(x.shape[-1])
    s = jnp.sum(x, axis=-1, keepdims=True)
    ss = jnp.sum(x * x, axis=-1, keepdims=True)
    mean = s * inv_n
    var = jnp.maximum(ss * inv_n - mean * mean, 0.0)
    xh = ((x - mean) * jax.lax.rsqrt(var + _LN_EPS)).astype(w_ref.dtype)
    y = jnp.dot(xh, w_ref[...], preferred_element_type=jnp.float32)
    y = y + b_ref[...].astype(jnp.float32)
    o_ref[...] = y.astype(o_ref.dtype)


def _row_tile(M, C4, C2p, x_sz, o_sz, w_sz, block_rows):
    """Largest token-row tile that fits the VMEM budget; >= ~8 steps on big M."""
    per_row = 2 * C4 * x_sz + 2 * C2p * o_sz + 4 * (2 * C4 + 2 * C2p)
    fixed = 2 * (C4 * C2p * w_sz + C2p * 4)
    t_vmem = max(8, (_VMEM_TILE_BUDGET - fixed) // per_row)
    # keep >= ~8 grid steps on large problems (v7x megacore), never below 512
    t_steps = max(_round_up(pl.cdiv(M, 8), 8), 512)
    return max(8, min(block_rows, t_vmem, t_steps))


@functools.partial(
    jax.jit,
    static_argnames=("input_resolution", "block_rows", "weight_dtype", "out_dtype"),
)
def patch_merging_pallas(x, gamma, beta, weight, *, input_resolution,
                         block_rows=1024, weight_dtype=None, out_dtype=None):
    """PatchMerging forward.

    x:      (B, L, C) with L == H*W      gamma/beta: (4C,) LayerNorm affine
    weight: (2C, 4C) bias-free nn.Linear weight      -> (B, L//4, 2C)
    """
    H, W = input_resolution
    B, L, C = x.shape
    assert L == H * W, "input feature has wrong size"
    assert H % 2 == 0 and W % 2 == 0, f"x size ({H}*{W}) are not even."
    H2, W2 = H // 2, W // 2
    C4, C2 = 4 * C, 2 * C
    N = B * H2                      # row-groups, each yields W2 merged tokens
    M = N * W2                      # merged tokens

    w_dtype = weight.dtype if weight_dtype is None else weight_dtype
    o_dtype = x.dtype if out_dtype is None else out_dtype

    # ---- fold the LayerNorm affine into the Linear, in f32 (cast once later) ----
    w_t = weight.astype(jnp.float32).T                        # (4C, 2C)
    w_fold = gamma.astype(jnp.float32)[:, None] * w_t         # (4C, 2C)
    b_fold = beta.astype(jnp.float32)[None, :] @ w_t          # (1, 2C), stays f32

    # ---- lane-dense output: pad 2C up to a multiple of 128 only if needed ----
    C2p = _round_up(C2, 128)
    if C2p != C2:
        w_fold = jnp.pad(w_fold, ((0, 0), (0, C2p - C2)))
        b_fold = jnp.pad(b_fold, ((0, 0), (0, C2p - C2)))

    T = _row_tile(M, C4, C2p, x.dtype.itemsize, np.dtype(o_dtype).itemsize,
                  np.dtype(w_dtype).itemsize, block_rows)

    cparams = dict(dimension_semantics=("parallel",),
                   vmem_limit_bytes=_VMEM_LIMIT_BYTES)

    if W2 % 8 == 0:
        # ---- fast path: gather in VMEM; x is only reshaped (no HBM copy) ----
        # (B, H*W, C) -> (B*H/2, 2, W/2, 2C): axis1 = h parity; last axis is
        # [even-w channels | odd-w channels].  Pure row-major reinterpretation.
        x_r = x.reshape(N, 2, W2, C2)
        # Row-permute the folded weight to the kernel's channel order:
        # even-h plane = [x0|x2] rows, odd-h plane = [x1|x3] rows.
        w_e = jnp.concatenate([w_fold[0:C], w_fold[2 * C:3 * C]], axis=0)
        w_o = jnp.concatenate([w_fold[C:2 * C], w_fold[3 * C:4 * C]], axis=0)
        w_e = w_e.astype(w_dtype)
        w_o = w_o.astype(w_dtype)

        tn = max(1, min(T // W2, N))
        rows = tn * W2                       # multiple of 8 since W2 % 8 == 0
        grid = (pl.cdiv(N, tn),)

        out = pl.pallas_call(
            _pm_kernel_fused,
            out_shape=jax.ShapeDtypeStruct((M, C2p), o_dtype),
            grid_spec=pltpu.PrefetchScalarGridSpec(
                num_scalar_prefetch=0,
                grid=grid,
                in_specs=[
                    pl.BlockSpec((tn, 2, W2, C2), lambda i: (i, 0, 0, 0)),
                    pl.BlockSpec((1, C2p), lambda i: (0, 0)),
                    pl.BlockSpec((C2, C2p), lambda i: (0, 0)),
                    pl.BlockSpec((C2, C2p), lambda i: (0, 0)),
                ],
                out_specs=pl.BlockSpec((rows, C2p), lambda i: (i, 0)),
            ),
            compiler_params=pltpu.CompilerParams(**cparams),
        )(x_r, b_fold, w_e, w_o)
    else:
        # ---- fallback: XLA-side gather into (M, 4C); no row padding ----
        xv = x.reshape(B, H2, 2, W2, 2, C)
        xm = jnp.concatenate(
            [xv[:, :, 0, :, 0, :], xv[:, :, 1, :, 0, :],
             xv[:, :, 0, :, 1, :], xv[:, :, 1, :, 1, :]], axis=-1)
        xm = xm.reshape(M, C4)
        w_all = w_fold.astype(w_dtype)

        tm = M if T >= M else max(8, (T // 8) * 8)
        grid = (pl.cdiv(M, tm),)

        out = pl.pallas_call(
            _pm_kernel_slab,
            out_shape=jax.ShapeDtypeStruct((M, C2p), o_dtype),
            grid_spec=pltpu.PrefetchScalarGridSpec(
                num_scalar_prefetch=0,
                grid=grid,
                in_specs=[
                    pl.BlockSpec((tm, C4), lambda i: (i, 0)),
                    pl.BlockSpec((1, C2p), lambda i: (0, 0)),
                    pl.BlockSpec((C4, C2p), lambda i: (0, 0)),
                ],
                out_specs=pl.BlockSpec((tm, C2p), lambda i: (i, 0)),
            ),
            compiler_params=pltpu.CompilerParams(
                allow_input_fusion=[True, False, False], **cparams),
        )(xm, b_fold, w_all)

    if C2p != C2:
        out = out[:, :C2]
    return out.reshape(B, H2 * W2, C2)


def patch_merging_ref(x, input_resolution, gamma, beta, weight):
    """Pure-JAX reference mirroring the PyTorch module exactly."""
    H, W = input_resolution
    B, L, C = x.shape
    xv = x.reshape(B, H, W, C)
    x0 = xv[:, 0::2, 0::2, :]
    x1 = xv[:, 1::2, 0::2, :]
    x2 = xv[:, 0::2, 1::2, :]
    x3 = xv[:, 1::2, 1::2, :]
    xm = jnp.concatenate([x0, x1, x2, x3], axis=-1).reshape(B, -1, 4 * C)
    mean = jnp.mean(xm, axis=-1, keepdims=True)
    var = jnp.mean((xm - mean) ** 2, axis=-1, keepdims=True)
    xn = (xm - mean) / jnp.sqrt(var + 1e-5) * gamma + beta
    return xn @ weight.T


def _make_inputs(B, H, W, C, key):
    kx, kw, kg, kb = jax.random.split(key, 4)
    x = jax.random.normal(kx, (B, H * W, C), dtype=jnp.float32)
    gamma = 1.0 + 0.1 * jax.random.normal(kg, (4 * C,), dtype=jnp.float32)
    beta = 0.1 * jax.random.normal(kb, (4 * C,), dtype=jnp.float32)
    bound = 1.0 / float(4 * C) ** 0.5
    weight = jax.random.uniform(kw, (2 * C, 4 * C), dtype=jnp.float32,
                                minval=-bound, maxval=bound)
    return x, gamma, beta, weight


if __name__ == "__main__":
    key = jax.random.PRNGKey(0)
    k1, k2 = jax.random.split(key)

    # 1) Fast path (W/2 % 8 == 0): in-kernel gather, f32, strict check.
    B, H, W, C = 2, 16, 16, 64
    x, g, b, w = _make_inputs(B, H, W, C, k1)
    out = patch_merging_pallas(x, g, b, w, input_resolution=(H, W))
    out = jax.block_until_ready(out)
    ref = patch_merging_ref(x, (H, W), g, b, w)
    assert out.shape == (B, (H // 2) * (W // 2), 2 * C)
    assert jnp.allclose(out, ref, atol=1e-4, rtol=1e-4)

    # 2) Fallback path (W/2 % 8 != 0): slab gather, f32, strict check.
    Bf, Hf, Wf, Cf = 2, 12, 12, 64
    xf, gf, bf, wf = _make_inputs(Bf, Hf, Wf, Cf, k2)
    outf = patch_merging_pallas(xf, gf, bf, wf, input_resolution=(Hf, Wf))
    outf = jax.block_until_ready(outf)
    reff = patch_merging_ref(xf, (Hf, Wf), gf, bf, wf)
    assert outf.shape == (Bf, (Hf // 2) * (Wf // 2), 2 * Cf)
    assert jnp.allclose(outf, reff, atol=1e-4, rtol=1e-4)

    # 3) Perf mode: bf16 weight + bf16 output on the fast path (loose check).
    out_bf = patch_merging_pallas(x, g, b, w, input_resolution=(H, W),
                                  weight_dtype=jnp.bfloat16,
                                  out_dtype=jnp.bfloat16)
    out_bf = jax.block_until_ready(out_bf)
    assert jnp.allclose(out_bf.astype(jnp.float32), ref, atol=1e-1, rtol=1e-1)

    print("KERNEL_OK")
</pallas_src>

<mosaic_0001>
module attributes {stable_mosaic.version = 11 : i64} {
  func.func @_pm_kernel_fused(%arg0: i32, %arg1: memref<16x2x8x128xf32, #tpu.memory_space<vmem>>, %arg2: memref<1x128xf32, #tpu.memory_space<vmem>>, %arg3: memref<128x128xf32, #tpu.memory_space<vmem>>, %arg4: memref<128x128xf32, #tpu.memory_space<vmem>>, %arg5: memref<128x128xf32, #tpu.memory_space<vmem>>) attributes {dimension_semantics = [#tpu.dimension_semantics<parallel>], iteration_bounds = array<i64: 1>, scalar_prefetch = 0 : i64, scratch_operands = 0 : i64, tpu.core_type = #tpu.core_type<tc>, window_params = [{transform_indices = @transform_0, window_bounds = array<i64: 16, 2, 8, 128>}, {pipeline_mode = #tpu.pipeline_mode<synchronous>, transform_indices = @transform_1, window_bounds = array<i64: 1, 128>}, {pipeline_mode = #tpu.pipeline_mode<synchronous>, transform_indices = @transform_2, window_bounds = array<i64: 128, 128>}, {pipeline_mode = #tpu.pipeline_mode<synchronous>, transform_indices = @transform_3, window_bounds = array<i64: 128, 128>}, {transform_indices = @transform_4, window_bounds = array<i64: 128, 128>}]} {
    %c0 = arith.constant 0 : index
    %c0_0 = arith.constant 0 : index
    %c0_1 = arith.constant 0 : index
    %c0_2 = arith.constant 0 : index
    %0 = vector.load %arg1[%c0, %c0_0, %c0_1, %c0_2] : memref<16x2x8x128xf32, #tpu.memory_space<vmem>>, vector<16x2x8x128xf32>
    %1 = vector.extract_strided_slice %0 {offsets = [0, 0, 0, 0], sizes = [16, 1, 8, 128], strides = [1, 1, 1, 1]} : vector<16x2x8x128xf32> to vector<16x1x8x128xf32>
    %2 = vector.shape_cast %1 : vector<16x1x8x128xf32> to vector<16x8x128xf32>
    %3 = vector.shape_cast %2 : vector<16x8x128xf32> to vector<128x128xf32>
    %4 = vector.extract_strided_slice %0 {offsets = [0, 1, 0, 0], sizes = [16, 1, 8, 128], strides = [1, 1, 1, 1]} : vector<16x2x8x128xf32> to vector<16x1x8x128xf32>
    %5 = vector.shape_cast %4 : vector<16x1x8x128xf32> to vector<16x8x128xf32>
    %6 = vector.shape_cast %5 : vector<16x8x128xf32> to vector<128x128xf32>
    %cst = arith.constant dense<0.000000e+00> : vector<128xf32>
    %7 = vector.multi_reduction <add>, %3, %cst [1] : vector<128x128xf32> to vector<128xf32>
    %8 = vector.shape_cast %7 : vector<128xf32> to vector<128x1xf32>
    %cst_3 = arith.constant dense<0.000000e+00> : vector<128xf32>
    %9 = vector.multi_reduction <add>, %6, %cst_3 [1] : vector<128x128xf32> to vector<128xf32>
    %10 = vector.shape_cast %9 : vector<128xf32> to vector<128x1xf32>
    %11 = arith.addf %8, %10 : vector<128x1xf32>
    %12 = arith.mulf %3, %3 : vector<128x128xf32>
    %cst_4 = arith.constant dense<0.000000e+00> : vector<128xf32>
    %13 = vector.multi_reduction <add>, %12, %cst_4 [1] : vector<128x128xf32> to vector<128xf32>
    %14 = vector.shape_cast %13 : vector<128xf32> to vector<128x1xf32>
    %15 = arith.mulf %6, %6 : vector<128x128xf32>
    %cst_5 = arith.constant dense<0.000000e+00> : vector<128xf32>
    %16 = vector.multi_reduction <add>, %15, %cst_5 [1] : vector<128x128xf32> to vector<128xf32>
    %17 = vector.shape_cast %16 : vector<128xf32> to vector<128x1xf32>
    %18 = arith.addf %14, %17 : vector<128x1xf32>
    %cst_6 = arith.constant 3.906250e-03 : f32
    %19 = vector.broadcast %cst_6 : f32 to vector<128x1xf32>
    %20 = arith.mulf %11, %19 : vector<128x1xf32>
    %cst_7 = arith.constant 3.906250e-03 : f32
    %21 = vector.broadcast %cst_7 : f32 to vector<128x1xf32>
    %22 = arith.mulf %18, %21 : vector<128x1xf32>
    %23 = arith.mulf %20, %20 : vector<128x1xf32>
    %24 = arith.subf %22, %23 : vector<128x1xf32>
    %cst_8 = arith.constant 0.000000e+00 : f32
    %25 = vector.broadcast %cst_8 : f32 to vector<128x1xf32>
    %26 = arith.maximumf %24, %25 : vector<128x1xf32>
    %cst_9 = arith.constant 9.99999974E-6 : f32
    %27 = vector.broadcast %cst_9 : f32 to vector<128x1xf32>
    %28 = arith.addf %26, %27 : vector<128x1xf32>
    %29 = math.rsqrt %28 : vector<128x1xf32>
    %30 = vector.broadcast %20 : vector<128x1xf32> to vector<128x128xf32>
    %31 = arith.subf %3, %30 : vector<128x128xf32>
    %32 = vector.broadcast %29 : vector<128x1xf32> to vector<128x128xf32>
    %33 = arith.mulf %31, %32 : vector<128x128xf32>
    %34 = vector.broadcast %20 : vector<128x1xf32> to vector<128x128xf32>
    %35 = arith.subf %6, %34 : vector<128x128xf32>
    %36 = vector.broadcast %29 : vector<128x1xf32> to vector<128x128xf32>
    %37 = arith.mulf %35, %36 : vector<128x128xf32>
    %c0_10 = arith.constant 0 : index
    %c0_11 = arith.constant 0 : index
    %38 = vector.load %arg3[%c0_10, %c0_11] : memref<128x128xf32, #tpu.memory_space<vmem>>, vector<128x128xf32>
    %cst_12 = arith.constant dense<0.000000e+00> : vector<128x128xf32>
    %39 = tpu.matmul %33, %38, %cst_12 {dimension_numbers = #tpu.dot_dimension_numbers<[1], [0], [0], [1], [0, 0, 1, 1], [], []>} : vector<128x128xf32>, vector<128x128xf32>, vector<128x128xf32> -> vector<128x128xf32>
    %c0_13 = arith.constant 0 : index
    %c0_14 = arith.constant 0 : index
    %40 = vector.load %arg4[%c0_13, %c0_14] : memref<128x128xf32, #tpu.memory_space<vmem>>, vector<128x128xf32>
    %cst_15 = arith.constant dense<0.000000e+00> : vector<128x128xf32>
    %41 = tpu.matmul %37, %40, %cst_15 {dimension_numbers = #tpu.dot_dimension_numbers<[1], [0], [0], [1], [0, 0, 1, 1], [], []>} : vector<128x128xf32>, vector<128x128xf32>, vector<128x128xf32> -> vector<128x128xf32>
    %42 = arith.addf %39, %41 : vector<128x128xf32>
    %c0_16 = arith.constant 0 : index
    %c0_17 = arith.constant 0 : index
    %43 = vector.load %arg2[%c0_16, %c0_17] : memref<1x128xf32, #tpu.memory_space<vmem>>, vector<1x128xf32>
    %44 = vector.broadcast %43 : vector<1x128xf32> to vector<128x128xf32>
    %45 = arith.addf %42, %44 : vector<128x128xf32>
    %c0_18 = arith.constant 0 : index
    %c0_19 = arith.constant 0 : index
    %46 = vector.load %arg5[%c0_18, %c0_19] : memref<128x128xf32, #tpu.memory_space<vmem>>, vector<128x128xf32>
    tpu.vector_store %arg5[%c0_18, %c0_19], %45 {strides = array<i32>} : memref<128x128xf32, #tpu.memory_space<vmem>>, vector<128x128xf32>,
    return
  }
  func.func @transform_0(%arg0: i32) -> (i32, i32, i32, i32) {
    %c0_i32 = arith.constant 0 : i32
    %c0_i32_0 = arith.constant 0 : i32
    %c0_i32_1 = arith.constant 0 : i32
    %c0_i32_2 = arith.constant 0 : i32
    return %arg0, %c0_i32, %c0_i32_0, %c0_i32_1 : i32, i32, i32, i32
  }
  func.func @transform_1(%arg0: i32) -> (i32, i32) {
    %c0_i32 = arith.constant 0 : i32
    %c0_i32_0 = arith.constant 0 : i32
    %c0_i32_1 = arith.constant 0 : i32
    return %c0_i32, %c0_i32_0 : i32, i32
  }
  func.func @transform_2(%arg0: i32) -> (i32, i32) {
    %c0_i32 = arith.constant 0 : i32
    %c0_i32_0 = arith.constant 0 : i32
    %c0_i32_1 = arith.constant 0 : i32
    return %c0_i32, %c0_i32_0 : i32, i32
  }
  func.func @transform_3(%arg0: i32) -> (i32, i32) {
    %c0_i32 = arith.constant 0 : i32
    %c0_i32_0 = arith.constant 0 : i32
    %c0_i32_1 = arith.constant 0 : i32
    return %c0_i32, %c0_i32_0 : i32, i32
  }
  func.func @transform_4(%arg0: i32) -> (i32, i32) {
    %c0_i32 = arith.constant 0 : i32
    %c0_i32_0 = arith.constant 0 : i32
    return %arg0, %c0_i32 : i32, i32
  }
}

</mosaic_0001>

<bundles_post_ra>
// kernel: patch_merging_pallas.1
= control target key start
LH: loop header
LB: loop body
LE: loop exit
PB: predicated region body
PF: predicated region fallthrough
CT: control target
= control target key end

     0   :  { %s1537_s0 = inlined_call_operand.vmem [shape: f32[16,2,8,128], index: 0, kind: input, shape index: {}]   ;;  %s1538_s1 = inlined_call_operand.vmem [shape: f32[1,128], index: 1, kind: input, shape index: {}]   ;;  %s1539_s2 = inlined_call_operand.vmem [shape: f32[128,128], index: 2, kind: input, shape index: {}]   ;;  %s1540_s3 = inlined_call_operand.vmem [shape: f32[128,128], index: 3, kind: input, shape index: {}]   ;;  %s1541_s4 = inlined_call_operand.hbm [shape: f32[128,128], index: 4, kind: output, shape index: {}]  }
   0x1   :  { %v1060_v0 = vld [vmem:[%s1537_s0 + $0x10] sm:$0xff]  ;;  %v1065_v1 = vld [vmem:[%s1537_s0] sm:$0xff]  ;;  %v1072_v2 = vld [vmem:[%s1537_s0 + $0x18] sm:$0xff] }
   0x2   :  { %52 = vadd.xlane.f32.xlu1 %v1060_v0  ;;  %50 = vadd.xlane.f32.xlu0 %v1065_v1  ;;  %v1077_v3 = vld [vmem:[%s1537_s0 + $0x8] sm:$0xff]  ;;  %v130_v5 = vmul.f32 %v1065_v1, %v1065_v1  ;;  %v179_v6 = vmul.f32 %v1072_v2, %v1072_v2  ;;  %v131_v7 = vmul.f32 %v1060_v0, %v1060_v0 }
   0x3   :  { %v178_v4 = vmul.f32 %v1077_v3, %v1077_v3 }
   0x6   :  { %84 = vadd.xlane.f32.xlu1 %v1072_v2  ;;  %82 = vadd.xlane.f32.xlu0 %v1077_v3 }
   0xa   :  { %194 = vadd.xlane.f32.xlu1 %v178_v4  ;;  %146 = vadd.xlane.f32.xlu0 %v130_v5 }
   0xb   :  { %9 = vsyncpa [#allocation3], 0  ;;  %v1092_v8 = vld [vmem:[%s1537_s0 + $0x28] sm:$0xff]  ;;  %v1097_v9 = vld [vmem:[%s1537_s0 + $0x20] sm:$0xff] }
   0xc   :  { %v449_v10 = vld [vmem:[%s1540_s3 + $0x78] sm:$0xff]  ;;  %v1115_v13 = vld [vmem:[%s1537_s0 + $0x30] sm:$0xff]  ;;  %v447_v16 = vld [vmem:[%s1540_s3 + $0x68] sm:$0xff]  ;;  %v180_v18 = vmul.f32 %v1092_v8, %v1092_v8  ;;  %v132_v19 = vmul.f32 %v1097_v9, %v1097_v9 }
   0xd   :  { %v433_v11 = vld [vmem:[%s1539_s2 + $0x78] sm:$0xff]  ;;  %860 = vmatprep.subr.mxu0 %v449_v10  ;;  %v448_v14 = vld [vmem:[%s1540_s3 + $0x70] sm:$0xff]  ;;  %v431_v17 = vld [vmem:[%s1539_s2 + $0x68] sm:$0xff]  ;;  %v133_v23 = vmul.f32 %v1115_v13, %v1115_v13 }
   0xe   :  { %196 = vadd.xlane.f32.xlu1 %v179_v6  ;;  %148 = vadd.xlane.f32.xlu0 %v131_v7  ;;  %v1110_v12 = vld [vmem:[%s1537_s0 + $0x38] sm:$0xff]  ;;  %v432_v15 = vld [vmem:[%s1539_s2 + $0x70] sm:$0xff]  ;;  %v446_v20 = vld [vmem:[%s1540_s3 + $0x60] sm:$0xff] }
   0xf   :  { %916 = vmatprep.subr.mxu1 %v433_v11  ;;  %861 = vmatpush3.msra.mxu0 %v449_v10  ;;  %v430_v21 = vld [vmem:[%s1539_s2 + $0x60] sm:$0xff]  ;;  %v181_v22 = vmul.f32 %v1110_v12, %v1110_v12  ;;  %v445_v24 = vld [vmem:[%s1540_s3 + $0x58] sm:$0xff]  ;;  %v444_v26 = vld [vmem:[%s1540_s3 + $0x50] sm:$0xff] }
  0x10   :  { %917 = vmatpush3.msra.mxu1 %v433_v11  ;;  %862 = vmatprep.subr.mxu0 %v448_v14  ;;  %v429_v25 = vld [vmem:[%s1539_s2 + $0x58] sm:$0xff]  ;;  %v428_v27 = vld [vmem:[%s1539_s2 + $0x50] sm:$0xff]  ;;  %v1160_v28 = vld [vmem:[%s1537_s0 + $0x48] sm:$0xff] }
  0x11   :  { %918 = vmatprep.subr.mxu1 %v432_v15  ;;  %863 = vmatpush3.msra.mxu0 %v448_v14  ;;  %v1165_v29 = vld [vmem:[%s1537_s0 + $0x40] sm:$0xff]  ;;  %v443_v30 = vld [vmem:[%s1540_s3 + $0x48] sm:$0xff]  ;;  %v1184_v34 = vld [vmem:[%s1537_s0 + $0x58] sm:$0xff]  ;;  %v182_v38 = vmul.f32 %v1160_v28, %v1160_v28 }
  0x12   :  { %86 = vadd.xlane.f32.xlu1 %v1092_v8  ;;  %54 = vadd.xlane.f32.xlu0 %v1097_v9  ;;  %v427_v31 = vld [vmem:[%s1539_s2 + $0x48] sm:$0xff]  ;;  %v442_v32 = vld [vmem:[%s1540_s3 + $0x40] sm:$0xff]  ;;  %v1189_v35 = vld [vmem:[%s1537_s0 + $0x50] sm:$0xff]  ;;  %v134_v39 = vmul.f32 %v1165_v29, %v1165_v29  ;;  %v183_v42 = vmul.f32 %v1184_v34, %v1184_v34 }
  0x13   :  { %919 = vmatpush3.msra.mxu1 %v432_v15  ;;  %864 = vmatprep.subr.mxu0 %v447_v16  ;;  %v426_v33 = vld [vmem:[%s1539_s2 + $0x40] sm:$0xff]  ;;  %v441_v36 = vld [vmem:[%s1540_s3 + $0x38] sm:$0xff]  ;;  %v440_v40 = vld [vmem:[%s1540_s3 + $0x30] sm:$0xff]  ;;  %v135_v43 = vmul.f32 %v1189_v35, %v1189_v35 }
  0x14   :  { %920 = vmatprep.subr.mxu1 %v431_v17  ;;  %865 = vmatpush3.msra.mxu0 %v447_v16  ;;  %v425_v37 = vld [vmem:[%s1539_s2 + $0x38] sm:$0xff]  ;;  %v424_v41 = vld [vmem:[%s1539_s2 + $0x30] sm:$0xff]  ;;  %v439_v44 = vld [vmem:[%s1540_s3 + $0x28] sm:$0xff] }
  0x15   :  { %921 = vmatpush3.msra.mxu1 %v431_v17  ;;  %866 = vmatprep.subr.mxu0 %v446_v20  ;;  %v423_v45 = vld [vmem:[%s1539_s2 + $0x28] sm:$0xff]  ;;  %v438_v46 = vld [vmem:[%s1540_s3 + $0x20] sm:$0xff]  ;;  %v437_v50 = vld [vmem:[%s1540_s3 + $0x18] sm:$0xff] }
  0x16   :  { %88 = vadd.xlane.f32.xlu1 %v1110_v12  ;;  %56 = vadd.xlane.f32.xlu0 %v1115_v13  ;;  %v422_v47 = vld [vmem:[%s1539_s2 + $0x20] sm:$0xff]  ;;  %v1228_v48 = vld [vmem:[%s1537_s0 + $0x68] sm:$0xff]  ;;  %v421_v51 = vld [vmem:[%s1539_s2 + $0x18] sm:$0xff] }
  0x17   :  { %922 = vmatprep.subr.mxu1 %v430_v21  ;;  %867 = vmatpush3.msra.mxu0 %v446_v20  ;;  %v1233_v49 = vld [vmem:[%s1537_s0 + $0x60] sm:$0xff]  ;;  %v436_v52 = vld [vmem:[%s1540_s3 + $0x10] sm:$0xff]  ;;  %v1252_v54 = vld [vmem:[%s1537_s0 + $0x78] sm:$0xff]  ;;  %v184_v58 = vmul.f32 %v1228_v48, %v1228_v48 }
  0x18   :  { %923 = vmatpush3.msra.mxu1 %v430_v21  ;;  %868 = vmatprep.subr.mxu0 %v445_v24  ;;  %v420_v53 = vld [vmem:[%s1539_s2 + $0x10] sm:$0xff]  ;;  %v435_v56 = vld [vmem:[%s1540_s3 + $0x8] sm:$0xff]  ;;  %v136_v59 = vmul.f32 %v1233_v49, %v1233_v49  ;;  %v434_v60 = vld [vmem:[%s1540_s3] sm:$0xff]  ;;  %v185_v62 = vmul.f32 %v1252_v54, %v1252_v54 }
  0x19   :  { %924 = vmatprep.subr.mxu1 %v429_v25  ;;  %869 = vmatpush3.msra.mxu0 %v445_v24  ;;  %v1257_v55 = vld [vmem:[%s1537_s0 + $0x70] sm:$0xff]  ;;  %v419_v57 = vld [vmem:[%s1539_s2 + $0x8] sm:$0xff]  ;;  %v418_v61 = vld [vmem:[%s1539_s2] sm:$0xff] }
  0x1a   :  { %198 = vadd.xlane.f32.xlu1 %v180_v18  ;;  %150 = vadd.xlane.f32.xlu0 %v132_v19  ;;  %v137_v63 = vmul.f32 %v1257_v55, %v1257_v55  ;;  %v1284_v4 = vld [vmem:[%s1537_s0 + $0x88] sm:$0xff]  ;;  %v1289_v5 = vld [vmem:[%s1537_s0 + $0x80] sm:$0xff]  ;;  %v1296_v6 = vld [vmem:[%s1537_s0 + $0x98] sm:$0xff] }
  0x1b   :  { %925 = vmatpush3.msra.mxu1 %v429_v25  ;;  %870 = vmatprep.subr.mxu0 %v444_v26  ;;  %v1301_v7 = vld [vmem:[%s1537_s0 + $0x90] sm:$0xff]  ;;  %v186_v10 = vmul.f32 %v1284_v4, %v1284_v4  ;;  %v138_v11 = vmul.f32 %v1289_v5, %v1289_v5  ;;  %v187_v14 = vmul.f32 %v1296_v6, %v1296_v6  ;;  %v1316_v16 = vld [vmem:[%s1537_s0 + $0xa8] sm:$0xff]  ;;  %v1321_v17 = vld [vmem:[%s1537_s0 + $0xa0] sm:$0xff] }
  0x1c   :  { %926 = vmatprep.subr.mxu1 %v428_v27  ;;  %871 = vmatpush3.msra.mxu0 %v444_v26  ;;  %v139_v15 = vmul.f32 %v1301_v7, %v1301_v7  ;;  %v1328_v18 = vld [vmem:[%s1537_s0 + $0xb8] sm:$0xff]  ;;  %v1333_v19 = vld [vmem:[%s1537_s0 + $0xb0] sm:$0xff]  ;;  %v188_v20 = vmul.f32 %v1316_v16, %v1316_v16  ;;  %v140_v21 = vmul.f32 %v1321_v17, %v1321_v17  ;;  %v1348_v24 = vld [vmem:[%s1537_s0 + $0xc8] sm:$0xff] }
  0x1d   :  { %927 = vmatpush3.msra.mxu1 %v428_v27  ;;  %872 = vmatprep.subr.mxu0 %v443_v30  ;;  %v1353_v25 = vld [vmem:[%s1537_s0 + $0xc0] sm:$0xff]  ;;  %v1360_v26 = vld [vmem:[%s1537_s0 + $0xd8] sm:$0xff]  ;;  %v1365_v27 = vld [vmem:[%s1537_s0 + $0xd0] sm:$0xff] }
  0x1e   :  { %200 = vadd.xlane.f32.xlu1 %v181_v22  ;;  %152 = vadd.xlane.f32.xlu0 %v133_v23  ;;  %v189_v22 = vmul.f32 %v1328_v18, %v1328_v18  ;;  %v141_v23 = vmul.f32 %v1333_v19, %v1333_v19 }
  0x1f   :  { %928 = vmatprep.subr.mxu1 %v427_v31  ;;  %873 = vmatpush3.msra.mxu0 %v443_v30  ;;  %v190_v30 = vmul.f32 %v1348_v24, %v1348_v24 }
  0x20   :  { %929 = vmatpush3.msra.mxu1 %v427_v31  ;;  %874 = vmatprep.subr.mxu0 %v442_v32  ;;  %v142_v31 = vmul.f32 %v1353_v25, %v1353_v25 }
  0x21   :  { %930 = vmatprep.subr.mxu1 %v426_v33  ;;  %875 = vmatpush3.msra.mxu0 %v442_v32  ;;  %v191_v32 = vmul.f32 %v1360_v26, %v1360_v26 }
  0x22   :  { %90 = vadd.xlane.f32.xlu1 %v1160_v28  ;;  %58 = vadd.xlane.f32.xlu0 %v1165_v29 }
  0x23   :  { %931 = vmatpush3.msra.mxu1 %v426_v33  ;;  %876 = vmatprep.subr.mxu0 %v441_v36  ;;  %v143_v33 = vmul.f32 %v1365_v27, %v1365_v27 }
  0x24   :  { %932 = vmatprep.subr.mxu1 %v425_v37  ;;  %877 = vmatpush3.msra.mxu0 %v441_v36  ;;  %v1380_v36 = vld [vmem:[%s1537_s0 + $0xe8] sm:$0xff] }
  0x25   :  { %933 = vmatpush3.msra.mxu1 %v425_v37  ;;  %878 = vmatprep.subr.mxu0 %v440_v40  ;;  %v1385_v37 = vld [vmem:[%s1537_s0 + $0xe0] sm:$0xff] }
  0x26   :  { %92 = vadd.xlane.f32.xlu1 %v1184_v34  ;;  %60 = vadd.xlane.f32.xlu0 %v1189_v35 }
  0x27   :  { %934 = vmatprep.subr.mxu1 %v424_v41  ;;  %879 = vmatpush3.msra.mxu0 %v440_v40  ;;  %v192_v40 = vmul.f32 %v1380_v36, %v1380_v36 }
  0x28   :  { %935 = vmatpush3.msra.mxu1 %v424_v41  ;;  %880 = vmatprep.subr.mxu0 %v439_v44  ;;  %v144_v41 = vmul.f32 %v1385_v37, %v1385_v37 }
  0x29   :  { %936 = vmatprep.subr.mxu1 %v423_v45  ;;  %881 = vmatpush3.msra.mxu0 %v439_v44 }
  0x2a   :  { %202 = vadd.xlane.f32.xlu1 %v182_v38  ;;  %154 = vadd.xlane.f32.xlu0 %v134_v39  ;;  %v1392_v38 = vld [vmem:[%s1537_s0 + $0xf8] sm:$0xff]  ;;  %v1397_v39 = vld [vmem:[%s1537_s0 + $0xf0] sm:$0xff] }
  0x2b   :  { %937 = vmatpush3.msra.mxu1 %v423_v45  ;;  %882 = vmatprep.subr.mxu0 %v438_v46 }
  0x2c   :  { %938 = vmatprep.subr.mxu1 %v422_v47  ;;  %883 = vmatpush3.msra.mxu0 %v438_v46 }
  0x2d   :  { %939 = vmatpush3.msra.mxu1 %v422_v47  ;;  %884 = vmatprep.subr.mxu0 %v437_v50 }
  0x2e   :  { %204 = vadd.xlane.f32.xlu1 %v183_v42  ;;  %156 = vadd.xlane.f32.xlu0 %v135_v43  ;;  %v193_v42 = vmul.f32 %v1392_v38, %v1392_v38  ;;  %v145_v43 = vmul.f32 %v1397_v39, %v1397_v39 }
  0x2f   :  { %940 = vmatprep.subr.mxu1 %v421_v51  ;;  %885 = vmatpush3.msra.mxu0 %v437_v50 }
  0x30   :  { %941 = vmatpush3.msra.mxu1 %v421_v51  ;;  %886 = vmatprep.subr.mxu0 %v436_v52 }
  0x31   :  { %942 = vmatprep.subr.mxu1 %v420_v53  ;;  %887 = vmatpush3.msra.mxu0 %v436_v52 }
  0x32   :  { %94 = vadd.xlane.f32.xlu1 %v1228_v48  ;;  %62 = vadd.xlane.f32.xlu0 %v1233_v49 }
  0x33   :  { %943 = vmatpush3.msra.mxu1 %v420_v53  ;;  %888 = vmatprep.subr.mxu0 %v435_v56 }
  0x34   :  { %944 = vmatprep.subr.mxu1 %v419_v57  ;;  %889 = vmatpush3.msra.mxu0 %v435_v56 }
  0x35   :  { %945 = vmatpush3.msra.mxu1 %v419_v57  ;;  %890 = vmatprep.subr.mxu0 %v434_v60 }
  0x36   :  { %96 = vadd.xlane.f32.xlu1 %v1252_v54  ;;  %64 = vadd.xlane.f32.xlu0 %v1257_v55 }
  0x37   :  { %946 = vmatprep.subr.mxu1 %v418_v61  ;;  %891 = vmatpush3.msra.mxu0 %v434_v60 }
  0x38   :  { %947 = vmatpush3.msra.mxu1 %v418_v61 }
  0x3a   :  { %206 = vadd.xlane.f32.xlu1 %v184_v58  ;;  %158 = vadd.xlane.f32.xlu0 %v136_v59 }
  0x3e   :  { %208 = vadd.xlane.f32.xlu1 %v185_v62  ;;  %160 = vadd.xlane.f32.xlu0 %v137_v63 }
  0x42   :  { %98 = vadd.xlane.f32.xlu1 %v1284_v4  ;;  %66 = vadd.xlane.f32.xlu0 %v1289_v5 }
  0x46   :  { %100 = vadd.xlane.f32.xlu1 %v1296_v6  ;;  %68 = vadd.xlane.f32.xlu0 %v1301_v7 }
  0x4a   :  { %210 = vadd.xlane.f32.xlu1 %v186_v10  ;;  %162 = vadd.xlane.f32.xlu0 %v138_v11 }
  0x4e   :  { %212 = vadd.xlane.f32.xlu1 %v187_v14  ;;  %164 = vadd.xlane.f32.xlu0 %v139_v15 }
  0x52   :  { %102 = vadd.xlane.f32.xlu1 %v1316_v16  ;;  %70 = vadd.xlane.f32.xlu0 %v1321_v17 }
  0x56   :  { %104 = vadd.xlane.f32.xlu1 %v1328_v18  ;;  %72 = vadd.xlane.f32.xlu0 %v1333_v19 }
  0x5a   :  { %214 = vadd.xlane.f32.xlu1 %v188_v20  ;;  %166 = vadd.xlane.f32.xlu0 %v140_v21 }
  0x5e   :  { %216 = vadd.xlane.f32.xlu1 %v189_v22  ;;  %168 = vadd.xlane.f32.xlu0 %v141_v23 }
  0x62   :  { %106 = vadd.xlane.f32.xlu1 %v1348_v24  ;;  %74 = vadd.xlane.f32.xlu0 %v1353_v25 }
  0x66   :  { %108 = vadd.xlane.f32.xlu1 %v1360_v26  ;;  %76 = vadd.xlane.f32.xlu0 %v1365_v27 }
  0x6a   :  { %218 = vadd.xlane.f32.xlu1 %v190_v30  ;;  %170 = vadd.xlane.f32.xlu0 %v142_v31 }
  0x6e   :  { %220 = vadd.xlane.f32.xlu1 %v191_v32  ;;  %172 = vadd.xlane.f32.xlu0 %v143_v33 }
  0x72   :  { %110 = vadd.xlane.f32.xlu1 %v1380_v36  ;;  %78 = vadd.xlane.f32.xlu0 %v1385_v37 }
  0x76   :  { %112 = vadd.xlane.f32.xlu1 %v1392_v38  ;;  %80 = vadd.xlane.f32.xlu0 %v1397_v39 }
  0x7a   :  { %222 = vadd.xlane.f32.xlu1 %v192_v40  ;;  %174 = vadd.xlane.f32.xlu0 %v144_v41 }
  0x7e   :  { %224 = vadd.xlane.f32.xlu1 %v193_v42  ;;  %176 = vadd.xlane.f32.xlu0 %v145_v43 }
  0x8b   :  { %v53_v44 = vpop.xlane.xlu1 %52  ;;  %v51_v45 = vpop.xlane.xlu0 %50 }
  0x8f   :  { %v85_v46 = vpop.xlane.xlu1 %84  ;;  %v83_v47 = vpop.xlane.xlu0 %82 }
  0x90   :  { %v114_v50 = vadd.f32 %v83_v47, %v51_v45  ;;  %v115_v51 = vadd.f32 %v85_v46, %v53_v44 }
  0x92   :  { %v242_v52 = vmul.f32 0.00390625, %v114_v50  ;;  %v243_v58 = vmul.f32 0.00390625, %v115_v51 }
  0x93   :  { %v195_v53 = vpop.xlane.xlu1 %194  ;;  %v147_v56 = vpop.xlane.xlu0 %146 }
  0x94   :  { %v226_v57 = vadd.f32 %v195_v53, %v147_v56  ;;  %v274_v59 = vmul.f32 %v242_v52, %v242_v52  ;;  %v275_v14 = vmul.f32 %v243_v58, %v243_v58 }
  0x96   :  { %v258_v60 = vmul.f32 0.00390625, %v226_v57 }
  0x97   :  { %v197_v61 = vpop.xlane.xlu1 %196  ;;  %v149_v62 = vpop.xlane.xlu0 %148 }
  0x98   :  { %v290_v63 = vsub.f32 %v258_v60, %v274_v59  ;;  %v227_v10 = vadd.f32 %v197_v61, %v149_v62  ;;  %v386_v62 = vsub.f32 %v1077_v3, %v242_v52 }
  0x9a   :  { %v306_v11 = vmax.f32 %v290_v63, 0.0  ;;  %v259_v15 = vmul.f32 0.00390625, %v227_v10 }
  0x9b   :  { %v87_v20 = vpop.xlane.xlu1 %86  ;;  %v55_v21 = vpop.xlane.xlu0 %54 }
  0x9c   :  { %v322_v22 = vadd.f32 1e-05, %v306_v11  ;;  %v291_v23 = vsub.f32 %v259_v15, %v275_v14  ;;  %v116_v31 = vadd.f32 %v87_v20, %v55_v21  ;;  %v354_v14 = vsub.f32 %v1065_v1, %v242_v52 }
  0x9e   :  { %975 = vrsqrt.f32 %v322_v22  ;;  %v307_v30 = vmax.f32 %v291_v23, 0.0  ;;  %v1409_v41 = vmul.f32 0.00390625, %v116_v31 }
  0x9f   :  { %v89_v32 = vpop.xlane.xlu1 %88  ;;  %v57_v33 = vpop.xlane.xlu0 %56 }
  0xa0   :  { %v323_v40 = vadd.f32 1e-05, %v307_v30  ;;  %v117_v42 = vadd.f32 %v89_v32, %v57_v33  ;;  %v276_v47 = vmul.f32 %v1409_v41, %v1409_v41  ;;  %v355_v32 = vsub.f32 %v1060_v0, %v243_v58 }
  0xa1   :  { %v387_v33 = vsub.f32 %v1072_v2, %v243_v58 }
  0xa2   :  { %977 = vrsqrt.f32 %v323_v40  ;;  %v1411_v46 = vmul.f32 0.00390625, %v117_v42 }
  0xa3   :  { %v199_v43 = vpop.xlane.xlu1 %198  ;;  %v151_v44 = vpop.xlane.xlu0 %150 }
  0xa4   :  { %v228_v45 = vadd.f32 %v199_v43, %v151_v44  ;;  %v277_v60 = vmul.f32 %v1411_v46, %v1411_v46 }
  0xa6   :  { %v260_v50 = vmul.f32 0.00390625, %v228_v45 }
  0xa7   :  { %v201_v51 = vpop.xlane.xlu1 %200  ;;  %v153_v53 = vpop.xlane.xlu0 %152 }
  0xa8   :  { %v292_v56 = vsub.f32 %v260_v50, %v276_v47  ;;  %v229_v57 = vadd.f32 %v201_v51, %v153_v53 }
  0xaa   :  { %v308_v59 = vmax.f32 %v292_v56, 0.0  ;;  %v261_v61 = vmul.f32 0.00390625, %v229_v57 }
  0xab   :  { %v976_v63 = vpop.eup %975  ;;  %v91_v10 = vpop.xlane.xlu1 %90 }
  0xac   :  { %v59_v11 = vpop.xlane.xlu0 %58  ;;  %v324_v15 = vadd.f32 1e-05, %v308_v59  ;;  %v293_v20 = vsub.f32 %v261_v61, %v277_v60  ;;  %v402_v21 = vmul.f32 %v976_v63, %v386_v62  ;;  %v370_v22 = vmul.f32 %v976_v63, %v354_v14 }
  0xad   :  { %v118_v30 = vadd.f32 %v91_v10, %v59_v11  ;;  %v388_v59 = vsub.f32 %v1092_v8, %v1409_v41  ;;  %v356_v10 = vsub.f32 %v1097_v9, %v1409_v41 }
  0xae   :  { %979 = vrsqrt.f32 %v324_v15  ;;  %v309_v23 = vmax.f32 %v293_v20, 0.0  ;;  %892 = vmatprep.mubr.f32.mxu0 %v402_v21  ;;  %948 = vmatprep.mubr.f32.mxu1 %v370_v22 }
  0xaf   :  { %v978_v31 = vpop.eup %977  ;;  %v93_v3 = vpop.xlane.xlu1 %92  ;;  %v1421_v1 = vmul.f32 0.00390625, %v118_v30 }
  0xb0   :  { %v61_v40 = vpop.xlane.xlu0 %60  ;;  %v325_v42 = vadd.f32 1e-05, %v309_v23  ;;  %v403_v43 = vmul.f32 %v978_v31, %v387_v33  ;;  %v371_v44 = vmul.f32 %v978_v31, %v355_v32  ;;  %v357_v31 = vsub.f32 %v1115_v13, %v1411_v46 }
  0xb1   :  { %v119_v52 = vadd.f32 %v93_v3, %v61_v40  ;;  %v278_v0 = vmul.f32 %v1421_v1, %v1421_v1  ;;  %v389_v32 = vsub.f32 %v1110_v12, %v1411_v46 }
  0xb2   :  { %981 = vrsqrt.f32 %v325_v42  ;;  %893 = vmatmul.mubr.f32.vlgmr.msra.gmra.mxu0 %v403_v43  ;;  %949 = vmatmul.mubr.f32.vlgmr.msra.gmra.mxu1 %v371_v44 }
  0xb3   :  { %v203_v45 = vpop.xlane.xlu1 %202  ;;  %v1423_v51 = vmul.f32 0.00390625, %v119_v52 }
  0xb4   :  { %v155_v47 = vpop.xlane.xlu0 %154 }
  0xb5   :  { %v230_v50 = vadd.f32 %v203_v45, %v155_v47  ;;  %v279_v61 = vmul.f32 %v1423_v51, %v1423_v51 }
  0xb7   :  { %v262_v2 = vmul.f32 0.00390625, %v230_v50  ;;  %v205_v58 = vpop.xlane.xlu1 %204 }
  0xb8   :  { %v157_v53 = vpop.xlane.xlu0 %156 }
  0xb9   :  { %v294_v56 = vsub.f32 %v262_v2, %v278_v0  ;;  %v231_v57 = vadd.f32 %v205_v58, %v157_v53  ;;  %v390_v58 = vsub.f32 %v1160_v28, %v1421_v1 }
  0xbb   :  { %v310_v60 = vmax.f32 %v294_v56, 0.0  ;;  %v263_v62 = vmul.f32 0.00390625, %v231_v57  ;;  %v980_v63 = vpop.eup %979  ;;  %v95_v11 = vpop.xlane.xlu1 %94 }
  0xbc   :  { %v63_v14 = vpop.xlane.xlu0 %62  ;;  %v404_v21 = vmul.f32 %v980_v63, %v388_v59  ;;  %v372_v22 = vmul.f32 %v980_v63, %v356_v10 }
  0xbd   :  { %v326_v15 = vadd.f32 1e-05, %v310_v60  ;;  %v295_v20 = vsub.f32 %v263_v62, %v279_v61  ;;  %v120_v30 = vadd.f32 %v95_v11, %v63_v14  ;;  %v358_v60 = vsub.f32 %v1165_v29, %v1421_v1 }
  0xbe   :  { %895 = vmatprep.mubr.f32.mxu0 %v404_v21  ;;  %951 = vmatprep.mubr.f32.mxu1 %v372_v22  ;;  %v359_v21 = vsub.f32 %v1189_v35, %v1423_v51  ;;  %v391_v22 = vsub.f32 %v1184_v34, %v1423_v51 }
  0xbf   :  { %983 = vrsqrt.f32 %v326_v15  ;;  %v311_v23 = vmax.f32 %v295_v20, 0.0  ;;  %v982_v8 = vpop.eup %981  ;;  %v97_v33 = vpop.xlane.xlu1 %96  ;;  %v1437_v42 = vmul.f32 0.00390625, %v120_v30 }
  0xc0   :  { %v65_v9 = vpop.xlane.xlu0 %64  ;;  %v405_v3 = vmul.f32 %v982_v8, %v389_v32  ;;  %v373_v40 = vmul.f32 %v982_v8, %v357_v31 }
  0xc1   :  { %v327_v41 = vadd.f32 1e-05, %v311_v23  ;;  %v121_v43 = vadd.f32 %v97_v33, %v65_v9  ;;  %v280_v12 = vmul.f32 %v1437_v42, %v1437_v42 }
  0xc2   :  { %896 = vmatmul.mubr.f32.gmra.mxu0 %v405_v3  ;;  %952 = vmatmul.mubr.f32.gmra.mxu1 %v373_v40 }
  0xc3   :  { %985 = vrsqrt.f32 %v327_v41  ;;  %v207_v44 = vpop.xlane.xlu1 %206  ;;  %v1439_v47 = vmul.f32 0.00390625, %v121_v43 }
  0xc4   :  { %v159_v52 = vpop.xlane.xlu0 %158 }
  0xc5   :  { %v232_v45 = vadd.f32 %v207_v44, %v159_v52  ;;  %v281_v56 = vmul.f32 %v1439_v47, %v1439_v47  ;;  %v392_v52 = vsub.f32 %v1228_v48, %v1437_v42 }
  0xc7   :  { %v264_v13 = vmul.f32 0.00390625, %v232_v45  ;;  %v209_v46 = vpop.xlane.xlu1 %208 }
  0xc8   :  { %v161_v50 = vpop.xlane.xlu0 %160 }
  0xc9   :  { %v296_v0 = vsub.f32 %v264_v13, %v280_v12  ;;  %v233_v2 = vadd.f32 %v209_v46, %v161_v50  ;;  %v360_v50 = vsub.f32 %v1233_v49, %v1437_v42 }
  0xcb   :  { %v312_v53 = vmax.f32 %v296_v0, 0.0  ;;  %v265_v57 = vmul.f32 0.00390625, %v233_v2  ;;  %v99_v61 = vpop.xlane.xlu1 %98 }
  0xcc   :  { %v984_v59 = vpop.eup %983  ;;  %v67_v62 = vpop.xlane.xlu0 %66 }
  0xcd   :  { %v328_v63 = vadd.f32 1e-05, %v312_v53  ;;  %v297_v10 = vsub.f32 %v265_v57, %v281_v56  ;;  %v406_v11 = vmul.f32 %v984_v59, %v390_v58  ;;  %v374_v14 = vmul.f32 %v984_v59, %v358_v60 }
  0xce   :  { %v122_v20 = vadd.f32 %v99_v61, %v67_v62  ;;  %v361_v61 = vsub.f32 %v1257_v55, %v1439_v47  ;;  %v393_v62 = vsub.f32 %v1252_v54, %v1439_v47 }
  0xcf   :  { %987 = vrsqrt.f32 %v328_v63  ;;  %v313_v15 = vmax.f32 %v297_v10, 0.0  ;;  %898 = vmatprep.mubr.f32.mxu0 %v406_v11  ;;  %954 = vmatprep.mubr.f32.mxu1 %v374_v14  ;;  %v101_v23 = vpop.xlane.xlu1 %100 }
  0xd0   :  { %v986_v28 = vpop.eup %985  ;;  %v69_v29 = vpop.xlane.xlu0 %68  ;;  %v1453_v31 = vmul.f32 0.00390625, %v122_v20 }
  0xd1   :  { %v329_v1 = vadd.f32 1e-05, %v313_v15  ;;  %v407_v30 = vmul.f32 %v986_v28, %v391_v22  ;;  %v375_v8 = vmul.f32 %v986_v28, %v359_v21  ;;  %v123_v32 = vadd.f32 %v101_v23, %v69_v29 }
  0xd2   :  { %v282_v34 = vmul.f32 %v1453_v31, %v1453_v31 }
  0xd3   :  { %989 = vrsqrt.f32 %v329_v1  ;;  %899 = vmatmul.mubr.f32.gmra.mxu0 %v407_v30  ;;  %955 = vmatmul.mubr.f32.gmra.mxu1 %v375_v8  ;;  %v211_v33 = vpop.xlane.xlu1 %210  ;;  %v1455_v3 = vmul.f32 0.00390625, %v123_v32  ;;  %v394_v30 = vsub.f32 %v1284_v4, %v1453_v31 }
  0xd4   :  { %v163_v9 = vpop.xlane.xlu0 %162 }
  0xd5   :  { %v234_v41 = vadd.f32 %v211_v33, %v163_v9  ;;  %v283_v12 = vmul.f32 %v1455_v3, %v1455_v3 }
  0xd7   :  { %v266_v35 = vmul.f32 0.00390625, %v234_v41  ;;  %v213_v51 = vpop.xlane.xlu1 %212  ;;  %v362_v41 = vsub.f32 %v1289_v5, %v1453_v31 }
  0xd8   :  { %v165_v40 = vpop.xlane.xlu0 %164 }
  0xd9   :  { %v298_v43 = vsub.f32 %v266_v35, %v282_v34  ;;  %v235_v44 = vadd.f32 %v213_v51, %v165_v40 }
  0xdb   :  { %v314_v45 = vmax.f32 %v298_v43, 0.0  ;;  %v267_v13 = vmul.f32 0.00390625, %v235_v44  ;;  %v103_v0 = vpop.xlane.xlu1 %102 }
  0xdc   :  { %v988_v46 = vpop.eup %987  ;;  %v71_v2 = vpop.xlane.xlu0 %70 }
  0xdd   :  { %v330_v58 = vadd.f32 1e-05, %v314_v45  ;;  %v299_v53 = vsub.f32 %v267_v13, %v283_v12  ;;  %v408_v56 = vmul.f32 %v988_v46, %v392_v52  ;;  %v376_v57 = vmul.f32 %v988_v46, %v360_v50 }
  0xde   :  { %v124_v60 = vadd.f32 %v103_v0, %v71_v2  ;;  %v363_v12 = vsub.f32 %v1301_v7, %v1455_v3  ;;  %v395_v13 = vsub.f32 %v1296_v6, %v1455_v3 }
  0xdf   :  { %991 = vrsqrt.f32 %v330_v58  ;;  %v315_v59 = vmax.f32 %v299_v53, 0.0  ;;  %901 = vmatprep.mubr.f32.mxu0 %v408_v56  ;;  %957 = vmatprep.mubr.f32.mxu1 %v376_v57  ;;  %v105_v63 = vpop.xlane.xlu1 %104 }
  0xe0   :  { %v990_v48 = vpop.eup %989  ;;  %v73_v49 = vpop.xlane.xlu0 %72  ;;  %v1469_v14 = vmul.f32 0.00390625, %v124_v60 }
  0xe1   :  { %v331_v42 = vadd.f32 1e-05, %v315_v59  ;;  %v409_v10 = vmul.f32 %v990_v48, %v393_v62  ;;  %v377_v11 = vmul.f32 %v990_v48, %v361_v61  ;;  %v125_v15 = vadd.f32 %v105_v63, %v73_v49 }
  0xe2   :  { %v284_v54 = vmul.f32 %v1469_v14, %v1469_v14  ;;  %v396_v62 = vsub.f32 %v1316_v16, %v1469_v14 }
  0xe3   :  { %993 = vrsqrt.f32 %v331_v42  ;;  %902 = vmatmul.mubr.f32.gmra.mxu0 %v409_v10  ;;  %958 = vmatmul.mubr.f32.gmra.mxu1 %v377_v11  ;;  %v215_v20 = vpop.xlane.xlu1 %214  ;;  %v1471_v22 = vmul.f32 0.00390625, %v125_v15  ;;  %v364_v11 = vsub.f32 %v1321_v17, %v1469_v14 }
  0xe4   :  { %v167_v28 = vpop.xlane.xlu0 %166 }
  0xe5   :  { %v236_v21 = vadd.f32 %v215_v20, %v167_v28  ;;  %v285_v32 = vmul.f32 %v1471_v22, %v1471_v22 }
  0xe7   :  { %v268_v55 = vmul.f32 0.00390625, %v236_v21  ;;  %v217_v47 = vpop.xlane.xlu1 %216 }
  0xe8   :  { %v169_v23 = vpop.xlane.xlu0 %168 }
  0xe9   :  { %v300_v29 = vsub.f32 %v268_v55, %v284_v54  ;;  %v237_v1 = vadd.f32 %v217_v47, %v169_v23 }
  0xeb   :  { %v316_v8 = vmax.f32 %v300_v29, 0.0  ;;  %v269_v33 = vmul.f32 0.00390625, %v237_v1  ;;  %v107_v34 = vpop.xlane.xlu1 %106  ;;  %v365_v29 = vsub.f32 %v1333_v19, %v1471_v22  ;;  %v397_v1 = vsub.f32 %v1328_v18, %v1471_v22 }
  0xec   :  { %v992_v9 = vpop.eup %991  ;;  %v75_v35 = vpop.xlane.xlu0 %74 }
  0xed   :  { %v332_v51 = vadd.f32 1e-05, %v316_v8  ;;  %v301_v40 = vsub.f32 %v269_v33, %v285_v32  ;;  %v410_v43 = vmul.f32 %v992_v9, %v394_v30  ;;  %v378_v44 = vmul.f32 %v992_v9, %v362_v41 }
  0xee   :  { %v126_v45 = vadd.f32 %v107_v34, %v75_v35 }
  0xef   :  { %995 = vrsqrt.f32 %v332_v51  ;;  %v317_v52 = vmax.f32 %v301_v40, 0.0  ;;  %904 = vmatprep.mubr.f32.mxu0 %v410_v43  ;;  %960 = vmatprep.mubr.f32.mxu1 %v378_v44  ;;  %v109_v46 = vpop.xlane.xlu1 %108 }
  0xf0   :  { %v994_v4 = vpop.eup %993  ;;  %v77_v5 = vpop.xlane.xlu0 %76  ;;  %v1485_v2 = vmul.f32 0.00390625, %v126_v45 }
  0xf1   :  { %v333_v31 = vadd.f32 1e-05, %v317_v52  ;;  %v411_v50 = vmul.f32 %v994_v4, %v395_v13  ;;  %v379_v0 = vmul.f32 %v994_v4, %v363_v12  ;;  %v127_v58 = vadd.f32 %v109_v46, %v77_v5 }
  0xf2   :  { %v286_v6 = vmul.f32 %v1485_v2, %v1485_v2  ;;  %v366_v52 = vsub.f32 %v1353_v25, %v1485_v2  ;;  %v398_v45 = vsub.f32 %v1348_v24, %v1485_v2 }
  0xf3   :  { %997 = vrsqrt.f32 %v333_v31  ;;  %905 = vmatmul.mubr.f32.gmra.mxu0 %v411_v50  ;;  %961 = vmatmul.mubr.f32.gmra.mxu1 %v379_v0  ;;  %v219_v53 = vpop.xlane.xlu1 %218  ;;  %v1487_v59 = vmul.f32 0.00390625, %v127_v58 }
  0xf4   :  { %v171_v56 = vpop.xlane.xlu0 %170 }
  0xf5   :  { %v238_v57 = vadd.f32 %v219_v53, %v171_v56  ;;  %v287_v49 = vmul.f32 %v1487_v59, %v1487_v59  ;;  %v367_v58 = vsub.f32 %v1365_v27, %v1487_v59  ;;  %v399_v53 = vsub.f32 %v1360_v26, %v1487_v59 }
  0xf7   :  { %v270_v7 = vmul.f32 0.00390625, %v238_v57  ;;  %v221_v3 = vpop.xlane.xlu1 %220 }
  0xf8   :  { %v173_v60 = vpop.xlane.xlu0 %172 }
  0xf9   :  { %v302_v48 = vsub.f32 %v270_v7, %v286_v6  ;;  %v239_v61 = vadd.f32 %v221_v3, %v173_v60 }
  0xfb   :  { %v318_v63 = vmax.f32 %v302_v48, 0.0  ;;  %v271_v42 = vmul.f32 0.00390625, %v239_v61  ;;  %v111_v15 = vpop.xlane.xlu1 %110 }
  0xfc   :  { %v996_v10 = vpop.eup %995  ;;  %v79_v20 = vpop.xlane.xlu0 %78 }
  0xfd   :  { %v334_v28 = vadd.f32 1e-05, %v318_v63  ;;  %v303_v21 = vsub.f32 %v271_v42, %v287_v49  ;;  %v412_v54 = vmul.f32 %v996_v10, %v396_v62  ;;  %v380_v55 = vmul.f32 %v996_v10, %v364_v11 }
  0xfe   :  { %v128_v23 = vadd.f32 %v111_v15, %v79_v20 }
  0xff   :  { %999 = vrsqrt.f32 %v334_v28  ;;  %v319_v47 = vmax.f32 %v303_v21, 0.0  ;;  %907 = vmatprep.mubr.f32.mxu0 %v412_v54  ;;  %963 = vmatprep.mubr.f32.mxu1 %v380_v55  ;;  %v113_v30 = vpop.xlane.xlu1 %112 }
 0x100   :  { %v998_v16 = vpop.eup %997  ;;  %v81_v17 = vpop.xlane.xlu0 %80  ;;  %v256_v33 = vmul.f32 0.00390625, %v128_v23 }
 0x101   :  { %v335_v14 = vadd.f32 1e-05, %v319_v47  ;;  %v413_v8 = vmul.f32 %v998_v16, %v397_v1  ;;  %v381_v32 = vmul.f32 %v998_v16, %v365_v29  ;;  %v129_v9 = vadd.f32 %v113_v30, %v81_v17 }
 0x102   :  { %v288_v40 = vmul.f32 %v256_v33, %v256_v33  ;;  %v368_v6 = vsub.f32 %v1385_v37, %v256_v33  ;;  %v400_v7 = vsub.f32 %v1380_v36, %v256_v33  ;;  %v1516_v36 = vld [vmem:[%s1538_s1] ss:$0 sm:$0xff]  ;;  %s1029_s1 = smov [#allocation2]  }
 0x103   :  { %1001 = vrsqrt.f32 %v335_v14  ;;  %908 = vmatmul.mubr.f32.gmra.mxu0 %v413_v8  ;;  %964 = vmatmul.mubr.f32.gmra.mxu1 %v381_v32  ;;  %v223_v41 = vpop.xlane.xlu1 %222  ;;  %v257_v51 = vmul.f32 0.00390625, %v129_v9  ;;  %s784_s10 = sshll.u32 %s1029_s1, 4  ;;  %s785_s10 = int_to_ptr.vmem [resolvable:$true] %s784_s10 }
 0x104   :  { %v175_v34 = vpop.xlane.xlu0 %174  ;;  %s1007_s11 = scalar_lea.vmem %s785_s10, 2048  ;;  %p1012_p1 = scmp.lt.s32.totalorder %s785_s10, %s785_s10 }
 0x105   :  { %v240_v35 = vadd.f32 %v223_v41, %v175_v34  ;;  %v289_v12 = vmul.f32 %v257_v51, %v257_v51  ;;  %v369_v26 = vsub.f32 %v1397_v39, %v257_v51  ;;  %v401_v59 = vsub.f32 %v1392_v38, %v257_v51  ;;  %p1008_p0 = scmp.ne.s32.totalorder %s785_s10, %s1007_s11  ;;  %p1013_p2 = scmp.lt.s32.totalorder %s1007_s11, %s1007_s11 }
 0x107   :  { %v272_v19 = vmul.f32 0.00390625, %v240_v35  ;;  %v225_v43 = vpop.xlane.xlu1 %224  ;;  %p1014_p3 = por %p1013_p2, %p1012_p1 }
 0x108   :  { %v177_v44 = vpop.xlane.xlu0 %176 }
 0x109   :  { %v304_v18 = vsub.f32 %v272_v19, %v288_v40  ;;  %v241_v22 = vadd.f32 %v225_v43, %v177_v44  ;;  %p1015_p4 = pnand %p1014_p3, %p1008_p0 }
 0x10b   :  { %v320_v4 = vmax.f32 %v304_v18, 0.0  ;;  %v273_v13 = vmul.f32 0.00390625, %v241_v22 }
 0x10c   :  { %v1000_v46 = vpop.eup %999 }
 0x10d   :  { %v336_v5 = vadd.f32 1e-05, %v320_v4  ;;  %v305_v31 = vsub.f32 %v273_v13, %v289_v12  ;;  %v414_v50 = vmul.f32 %v1000_v46, %v398_v45  ;;  %v382_v0 = vmul.f32 %v1000_v46, %v366_v52 }
 0x10f   :  { %1003 = vrsqrt.f32 %v336_v5  ;;  %v321_v56 = vmax.f32 %v305_v31, 0.0  ;;  %910 = vmatprep.mubr.f32.mxu0 %v414_v50  ;;  %966 = vmatprep.mubr.f32.mxu1 %v382_v0 }
 0x110   :  { %v1002_v25 = vpop.eup %1001 }
 0x111   :  { %v337_v24 = vadd.f32 1e-05, %v321_v56  ;;  %v415_v2 = vmul.f32 %v1002_v25, %v399_v53  ;;  %v383_v57 = vmul.f32 %v1002_v25, %v367_v58 }
 0x113   :  { %1005 = vrsqrt.f32 %v337_v24  ;;  %911 = vmatmul.mubr.f32.gmra.mxu0 %v415_v2  ;;  %967 = vmatmul.mubr.f32.gmra.mxu1 %v383_v57 }
 0x11c   :  { %v1004_v3 = vpop.eup %1003 }
 0x11d   :  { %v416_v27 = vmul.f32 %v1004_v3, %v400_v7  ;;  %v384_v60 = vmul.f32 %v1004_v3, %v368_v6 }
 0x11f   :  { %913 = vmatprep.mubr.f32.mxu0 %v416_v27  ;;  %969 = vmatprep.mubr.f32.mxu1 %v384_v60 }
 0x120   :  { %v1006_v48 = vpop.eup %1005 }
 0x121   :  { %v417_v61 = vmul.f32 %v1006_v48, %v401_v59  ;;  %v385_v62 = vmul.f32 %v1006_v48, %v369_v26 }
 0x123   :  { %914 = vmatmul.mubr.f32.gmra.mxu0 %v417_v61  ;;  %970 = vmatmul.mubr.f32.gmra.mxu1 %v385_v62 }
 0x172   :  { %v894_v63 = vpop.f32.mrf.mxu0  ;;  %v950_v49 = vpop.f32.mrf.mxu1 }
 0x173   :  { %v667_v37 = vadd.f32 %v950_v49, %v894_v63 }
 0x174   :  { %v516_v42 = vpop.f32.mrf.mxu0  ;;  %v661_v10 = vpop.f32.mrf.mxu1 }
 0x175   :  { %v748_v39 = vadd.f32 %v1516_v36, %v667_v37  ;;  %v662_v38 = vadd.f32 %v661_v10, %v516_v42 }
 0x177   :  { %764 = vst [vmem:[#allocation2 + $0x8] sm:$0xff] %v748_v39  ;;  %v747_v11 = vadd.f32 %v1516_v36, %v662_v38 }
 0x179   :  { %763 = vst [vmem:[#allocation2] sm:$0xff] %v747_v11 }
 0x182   :  { %v897_v15 = vpop.f32.mrf.mxu0  ;;  %v953_v20 = vpop.f32.mrf.mxu1 }
 0x183   :  { %v677_v28 = vadd.f32 %v953_v20, %v897_v15 }
 0x184   :  { %v526_v21 = vpop.f32.mrf.mxu0  ;;  %v671_v54 = vpop.f32.mrf.mxu1 }
 0x185   :  { %v750_v55 = vadd.f32 %v1516_v36, %v677_v28  ;;  %v672_v47 = vadd.f32 %v671_v54, %v526_v21 }
 0x187   :  { %766 = vst [vmem:[#allocation2 + $0x18] sm:$0xff] %v750_v55  ;;  %v749_v23 = vadd.f32 %v1516_v36, %v672_v47 }
 0x189   :  { %765 = vst [vmem:[#allocation2 + $0x10] sm:$0xff] %v749_v23 }
 0x193   :  { %v900_v16 = vpop.f32.mrf.mxu0  ;;  %v956_v29 = vpop.f32.mrf.mxu1 }
 0x194   :  { %v687_v1 = vadd.f32 %v956_v29, %v900_v16 }
 0x195   :  { %v536_v30 = vpop.f32.mrf.mxu0  ;;  %v681_v17 = vpop.f32.mrf.mxu1 }
 0x196   :  { %v752_v14 = vadd.f32 %v1516_v36, %v687_v1  ;;  %v682_v8 = vadd.f32 %v681_v17, %v536_v30 }
 0x198   :  { %768 = vst [vmem:[#allocation2 + $0x28] sm:$0xff] %v752_v14  ;;  %v751_v32 = vadd.f32 %v1516_v36, %v682_v8 }
 0x19a   :  { %767 = vst [vmem:[#allocation2 + $0x20] sm:$0xff] %v751_v32 }
 0x1a3   :  { %v903_v33 = vpop.f32.mrf.mxu0  ;;  %v959_v9 = vpop.f32.mrf.mxu1 }
 0x1a4   :  { %v697_v41 = vadd.f32 %v959_v9, %v903_v33 }
 0x1a5   :  { %v546_v34 = vpop.f32.mrf.mxu0  ;;  %v691_v35 = vpop.f32.mrf.mxu1 }
 0x1a6   :  { %v754_v51 = vadd.f32 %v1516_v36, %v697_v41  ;;  %v692_v40 = vadd.f32 %v691_v35, %v546_v34 }
 0x1a8   :  { %770 = vst [vmem:[#allocation2 + $0x38] sm:$0xff] %v754_v51  ;;  %v753_v19 = vadd.f32 %v1516_v36, %v692_v40 }
 0x1aa   :  { %769 = vst [vmem:[#allocation2 + $0x30] sm:$0xff] %v753_v19 }
 0x1b3   :  { %v906_v43 = vpop.f32.mrf.mxu0  ;;  %v962_v44 = vpop.f32.mrf.mxu1 }
 0x1b4   :  { %v707_v18 = vadd.f32 %v962_v44, %v906_v43 }
 0x1b5   :  { %v556_v22 = vpop.f32.mrf.mxu0  ;;  %v701_v52 = vpop.f32.mrf.mxu1 }
 0x1b6   :  { %v756_v45 = vadd.f32 %v1516_v36, %v707_v18  ;;  %v702_v4 = vadd.f32 %v701_v52, %v556_v22 }
 0x1b8   :  { %772 = vst [vmem:[#allocation2 + $0x48] sm:$0xff] %v756_v45  ;;  %v755_v12 = vadd.f32 %v1516_v36, %v702_v4 }
 0x1ba   :  { %771 = vst [vmem:[#allocation2 + $0x40] sm:$0xff] %v755_v12 }
 0x1c3   :  { %v909_v13 = vpop.f32.mrf.mxu0  ;;  %v965_v46 = vpop.f32.mrf.mxu1 }
 0x1c4   :  { %v717_v5 = vadd.f32 %v965_v46, %v909_v13 }
 0x1c5   :  { %v566_v31 = vpop.f32.mrf.mxu0  ;;  %v711_v50 = vpop.f32.mrf.mxu1 }
 0x1c6   :  { %v758_v0 = vadd.f32 %v1516_v36, %v717_v5  ;;  %v712_v58 = vadd.f32 %v711_v50, %v566_v31 }
 0x1c8   :  { %774 = vst [vmem:[#allocation2 + $0x58] sm:$0xff] %v758_v0  ;;  %v757_v53 = vadd.f32 %v1516_v36, %v712_v58 }
 0x1ca   :  { %773 = vst [vmem:[#allocation2 + $0x50] sm:$0xff] %v757_v53 }
 0x1d3   :  { %v912_v56 = vpop.f32.mrf.mxu0  ;;  %v968_v25 = vpop.f32.mrf.mxu1 }
 0x1d4   :  { %v727_v24 = vadd.f32 %v968_v25, %v912_v56 }
 0x1d5   :  { %v576_v2 = vpop.f32.mrf.mxu0  ;;  %v721_v57 = vpop.f32.mrf.mxu1 }
 0x1d6   :  { %v760_v6 = vadd.f32 %v1516_v36, %v727_v24  ;;  %v722_v7 = vadd.f32 %v721_v57, %v576_v2 }
 0x1d8   :  { %776 = vst [vmem:[#allocation2 + $0x68] sm:$0xff] %v760_v6  ;;  %v759_v3 = vadd.f32 %v1516_v36, %v722_v7 }
 0x1da   :  { %775 = vst [vmem:[#allocation2 + $0x60] sm:$0xff] %v759_v3 }
 0x1e3   :  { %v915_v27 = vpop.f32.mrf.mxu0  ;;  %v971_v60 = vpop.f32.mrf.mxu1 }
 0x1e4   :  { %v737_v26 = vadd.f32 %v971_v60, %v915_v27 }
 0x1e5   :  { %v586_v59 = vpop.f32.mrf.mxu0  ;;  %v731_v48 = vpop.f32.mrf.mxu1 }
 0x1e6   :  { %v762_v61 = vadd.f32 %v1516_v36, %v737_v26  ;;  %v732_v62 = vadd.f32 %v731_v48, %v586_v59 }
 0x1e8   :  { %778 = vst [vmem:[#allocation2 + $0x78] sm:$0xff] %v762_v61  ;;  %v761_v63 = vadd.f32 %v1516_v36, %v732_v62 }
 0x1ea   :  { %777 = vst [vmem:[#allocation2 + $0x70] sm:$0xff] %v761_v63 }
 0x1eb   :  { %1018 = shalt.err (!%p1015_p4)
}
 0x1ec   :  { %s1030_s12 = smov 128   ;;  %s1031_s13 = smov 8  }
 0x1ed   :  { %790 = dma.vmem_to_hbm [thread:$0]  %s785_s10, 2048, %s1541_s4, [#allocation3], %s1030_s12, %s1030_s12, %s1031_s13  }
 0x1ee   :  { %1027 = dma.done.wait [#allocation3], 2048  }
 0x1ef   :  { %1028 = vsyncadd [#allocation3], 4294965248 }
 0x1f0   :  { %794 = vsyncpa [#allocation3], 1 }

</bundles_post_ra>
